<compile_context>
chip_gen: v7x
topology: tpu7x:2x2x1
jax: 0.10.0
libtpu: 0.0.40
codegen_flags: <defaults>
</compile_context>

<pallas_src>
import math
from functools import partial

import jax
import jax.numpy as jnp
from jax.experimental import pallas as pl
from jax.experimental.pallas import tpu as pltpu

# small synthetic shapes
B, S, D = 2, 8, 32          # batch, seq, hidden
H = 2                       # attention heads
HD = D // H                 # head dim
I = 64                      # MLP intermediate
V = 128                     # vocab size (unembedding output)
EPS = 1e-6
N = B * S                   # tokens per forward
N_SRC = 4                   # logit-lens sources decoded per forward
M_TOT = N_SRC * N           # rows fed to the fused unembed matmul

TV = min(V, 512)            # unembed vocab tile (shrink on v7x at real V)
assert V % TV == 0
NV = V // TV
TM_U = 32                   # unembed M tile (>=2 tiles so both v7x cores work)
assert M_TOT % TM_U == 0
NM = M_TOT // TM_U

CDT = jnp.bfloat16          # MXU compute dtype (f32 accumulation everywhere)
VMEM_LIMIT = 32 * 1024 * 1024


def _rms_norm(x, gamma):
    # x: [..., D] f32, gamma: [1, D] f32
    var = jnp.mean(x * x, axis=-1, keepdims=True)
    return x * jax.lax.rsqrt(var + EPS) * gamma


# ---------------------------------------------------------------------------
# Kernel 1: full decoder block (RMSNorm -> causal MHA -> residual -> RMSNorm
# -> SwiGLU MLP -> residual), grid over batch ("parallel" so both v7x cores
# get work).  Projections are single fused MXU matmuls in bf16; per-head
# softmax math stays f32.
# ---------------------------------------------------------------------------
def _block_kernel(x_ref, ln1_ref, wqkv_ref, wo_ref, ln2_ref, wgu_ref, wd_ref,
                  block_out_ref, attn_out_ref, mlp_out_ref, ctx_ref):
    x = x_ref[0]                                            # [S, D] f32

    # input RMSNorm + fused QKV projection (one MXU op, N = 3D)
    hn = _rms_norm(x, ln1_ref[...])
    qkv = jnp.dot(hn.astype(CDT), wqkv_ref[...],
                  preferred_element_type=jnp.float32)       # [S, 3D] f32

    row = jax.lax.broadcasted_iota(jnp.int32, (S, S), 0)
    col = jax.lax.broadcasted_iota(jnp.int32, (S, S), 1)
    causal = row >= col                                     # [S, S]
    scale = 1.0 / math.sqrt(HD)

    # per-head attention (static unroll, H is small); contexts are written
    # into a [S, H*HD] VMEM scratch so the output projection is ONE matmul.
    # TODO(synk): for large H switch to a head-blocked layout / flash loop.
    for h in range(H):
        q_h = qkv[:, h * HD:(h + 1) * HD] * scale           # [S, HD]
        k_h = qkv[:, D + h * HD:D + (h + 1) * HD]           # [S, HD]
        v_h = qkv[:, 2 * D + h * HD:2 * D + (h + 1) * HD]   # [S, HD]

        s_h = jax.lax.dot_general(q_h, k_h, (((1,), (1,)), ((), ())),
                                  preferred_element_type=jnp.float32)  # [S, S]
        s_h = jnp.where(causal, s_h, -1e30)
        s_h = s_h - jnp.max(s_h, axis=-1, keepdims=True)
        p_h = jnp.exp(s_h)
        p_h = p_h * pl.reciprocal(jnp.sum(p_h, axis=-1, keepdims=True),
                                  approx=True)
        ctx_ref[:, h * HD:(h + 1) * HD] = jnp.dot(
            p_h, v_h, preferred_element_type=jnp.float32)   # [S, HD]

    # single fused output projection [S, H*HD] x [H*HD, D]
    attn = jnp.dot(ctx_ref[...].astype(CDT), wo_ref[...],
                   preferred_element_type=jnp.float32)      # [S, D]
    attn_out_ref[0] = attn                                  # AttnWrapper.activations

    resid = x + attn

    # post-attention RMSNorm + SwiGLU MLP (gate/up fused into one matmul)
    h2 = _rms_norm(resid, ln2_ref[...]).astype(CDT)
    gu = jnp.dot(h2, wgu_ref[...], preferred_element_type=jnp.float32)  # [S, 2I]
    g = gu[:, :I]
    u = gu[:, I:]
    act = g * jax.nn.sigmoid(g) * u
    mlp = jnp.dot(act.astype(CDT), wd_ref[...],
                  preferred_element_type=jnp.float32)       # [S, D]
    mlp_out_ref[0] = mlp
    block_out_ref[0] = resid + mlp


def _invariant(shape):
    n = len(shape)
    return pl.BlockSpec(shape, lambda b, _n=n: (0,) * _n)


def run_block(x, p):
    # TODO(synk): at production D/I, add K/N tiling ('arbitrary' axis + f32
    # accumulator) and pl.Buffered(1) on the grid-invariant weight specs.
    return pl.pallas_call(
        _block_kernel,
        out_shape=(jax.ShapeDtypeStruct((B, S, D), jnp.float32),) * 3,
        grid=(B,),
        in_specs=[
            pl.BlockSpec((1, S, D), lambda b: (b, 0, 0)),   # x
            _invariant((1, D)),                             # ln1 gamma (f32)
            _invariant((D, 3 * D)),                         # wqkv (bf16)
            _invariant((D, D)),                             # wo   (bf16)
            _invariant((1, D)),                             # ln2 gamma (f32)
            _invariant((D, 2 * I)),                         # gate|up (bf16)
            _invariant((I, D)),                             # down (bf16)
        ],
        out_specs=(pl.BlockSpec((1, S, D), lambda b: (b, 0, 0)),) * 3,
        scratch_shapes=[pltpu.VMEM((S, D), jnp.float32)],   # per-head ctx -> [S, H*HD]
        compiler_params=pltpu.CompilerParams(
            dimension_semantics=("parallel",),
            vmem_limit_bytes=VMEM_LIMIT),
    )(x, p["ln1"], p["wqkv"], p["wo"], p["ln2"], p["wgu"], p["wd"])


# ---------------------------------------------------------------------------
# Kernel 2: fused unembedding for ALL four logit-lens sources.  The sources
# are already final-RMSNormed and flattened to [N_SRC*N, D] (norm hoisted out
# of the V-tile loop), so the kernel is a pure bf16 matmul.  W_u tile index
# depends only on the outer V axis -> resident across the inner M steps.
# ---------------------------------------------------------------------------
def _unembed_kernel(xn_ref, w_ref, out_ref):
    out_ref[...] = jnp.dot(xn_ref[...], w_ref[...],
                           preferred_element_type=jnp.float32)   # [TM_U, TV]


def fused_unembed(xn, w_unembed_t):
    # xn: [M_TOT, D] bf16 (pre-normalized), w: [D, V] bf16 -> [M_TOT, V] f32
    return pl.pallas_call(
        _unembed_kernel,
        out_shape=jax.ShapeDtypeStruct((M_TOT, V), jnp.float32),
        grid=(NV, NM),
        in_specs=[
            pl.BlockSpec((TM_U, D), lambda vj, mi: (mi, 0)),     # sources
            pl.BlockSpec((D, TV),   lambda vj, mi: (0, vj)),     # W_u tile (resident over mi)
        ],
        out_specs=pl.BlockSpec((TM_U, TV), lambda vj, mi: (mi, vj)),
        compiler_params=pltpu.CompilerParams(
            dimension_semantics=("parallel", "parallel"),
            vmem_limit_bytes=VMEM_LIMIT),
    )(xn, w_unembed_t)


# ---------------------------------------------------------------------------
# One jitted program for the whole forward hot path.
# ---------------------------------------------------------------------------
@partial(jax.jit, static_argnames=("perturb", "decode"))
def _forward_jit(x, params, add_vec, gamma, w_unembed_t, *, perturb, decode):
    block_out, attn_out, mlp_out = run_block(x, params)

    # steering-vector add: plain jnp (XLA fuses it into the program).
    out0 = block_out + add_vec if perturb else block_out

    if not decode:
        return out0, block_out, attn_out, mlp_out, None

    resid = attn_out + x            # mirrors `attn_output += args[0]`

    # Final RMSNorm of all 4 sources hoisted out of the V-tile loop; the
    # source axis is flattened into the matmul M dimension.
    stacked = jnp.stack([out0, attn_out, resid, mlp_out], axis=0).reshape(M_TOT, D)
    xn = _rms_norm(stacked, gamma).astype(CDT)
    logits = fused_unembed(xn, w_unembed_t).reshape(N_SRC, B, S, V)
    return out0, block_out, attn_out, mlp_out, (logits, resid)


# ---------------------------------------------------------------------------
# Python-side wrapper replicating BlockOutputWrapper semantics.
# ---------------------------------------------------------------------------
class BlockOutputWrapper:
    def __init__(self, block_params, unembed_w_t, final_norm_gamma):
        self.block_params = block_params
        self.unembed_w_t = unembed_w_t            # [D, V] bf16 (Linear weight .T)
        self.final_norm_gamma = final_norm_gamma  # [1, D] f32

        self.attn_activations = None              # mirrors AttnWrapper.activations
        self.attn_out_unembedded = None
        self.intermediate_resid_unembedded = None
        self.mlp_out_unembedded = None
        self.block_out_unembedded = None
        self.block_output_unembedded = None
        self.activations = None
        self.add_activations = None
        self.save_internal_decodings = False
        self.only_add_to_first_token = False
        self.is_first_token = True

    def should_perturb_activations(self):
        if self.add_activations is None:
            return False
        if self.only_add_to_first_token:
            return self.is_first_token
        return True

    def forward(self, hidden_states):
        perturb = self.should_perturb_activations()
        decode = bool(self.save_internal_decodings)
        add_vec = self.add_activations if perturb else None

        out0, block_out, attn_out, mlp_out, extra = _forward_jit(
            hidden_states, self.block_params, add_vec,
            self.final_norm_gamma, self.unembed_w_t,
            perturb=perturb, decode=decode)

        self.activations = block_out          # unperturbed block output
        self.attn_activations = attn_out      # AttnWrapper.activations
        if perturb:
            self.is_first_token = False

        output = (out0,)
        if not decode:
            return output

        logits, resid = extra
        self.block_output_unembedded = logits[0]      # unembed(norm(perturbed block out))
        self.attn_out_unembedded = logits[1]          # unembed(norm(attn out))
        # reference does `attn_output += args[0]` in place, which also mutates
        # the stored attention activations
        self.attn_activations = resid
        self.intermediate_resid_unembedded = logits[2]
        # block.mlp(post_attention_layernorm(attn_output)) equals the block's
        # internal (unperturbed-residual) mlp branch -> reuse mlp_out.
        self.mlp_out_unembedded = logits[3]
        return output

    def add(self, activations):
        self.add_activations = activations

    def reset(self):
        self.add_activations = None
        self.activations = None
        self.attn_activations = None
        self.is_first_token = True


# ---------------------------------------------------------------------------
# Deterministic synthetic parameter init (no checkpoint loading).
# Host-side "glue": Q/K/V and gate/up are fused into single weight matrices
# so the kernel issues single MXU matmuls; matmul weights are stored in bf16.
# ---------------------------------------------------------------------------
def init_params(key):
    ks = jax.random.split(key, 8)
    sd = 0.05
    wq = sd * jax.random.normal(ks[0], (D, D), jnp.float32)
    wk = sd * jax.random.normal(ks[1], (D, D), jnp.float32)
    wv = sd * jax.random.normal(ks[2], (D, D), jnp.float32)
    wo = sd * jax.random.normal(ks[3], (D, D), jnp.float32)
    wg = sd * jax.random.normal(ks[4], (D, I), jnp.float32)
    wu = sd * jax.random.normal(ks[5], (D, I), jnp.float32)
    wd = sd * jax.random.normal(ks[6], (I, D), jnp.float32)
    block = {
        "ln1": jnp.ones((1, D), jnp.float32),
        "wqkv": jnp.concatenate([wq, wk, wv], axis=1).astype(CDT),   # [D, 3D]
        "wo": wo.astype(CDT),                                        # [D, D]
        "ln2": jnp.ones((1, D), jnp.float32),
        "wgu": jnp.concatenate([wg, wu], axis=1).astype(CDT),        # [D, 2I]
        "wd": wd.astype(CDT),                                        # [I, D]
    }
    unembed_w_t = (sd * jax.random.normal(ks[7], (D, V), jnp.float32)).astype(CDT)
    final_norm_gamma = jnp.ones((1, D), jnp.float32)
    return block, unembed_w_t, final_norm_gamma


if __name__ == "__main__":
    key = jax.random.PRNGKey(0)
    k_params, k_x, k_add = jax.random.split(key, 3)

    block_params, unembed_w_t, final_gamma = init_params(k_params)
    wrapper = BlockOutputWrapper(block_params, unembed_w_t, final_gamma)

    x = jax.random.normal(k_x, (B, S, D), jnp.float32)

    # exercise both the steering-vector add path and the internal decodings
    wrapper.save_internal_decodings = True
    wrapper.add(0.1 * jax.random.normal(k_add, (1, D), jnp.float32))

    out = wrapper.forward(x)

    jax.block_until_ready(out[0])
    jax.block_until_ready(wrapper.block_output_unembedded)
    jax.block_until_ready(wrapper.attn_out_unembedded)
    jax.block_until_ready(wrapper.intermediate_resid_unembedded)
    jax.block_until_ready(wrapper.mlp_out_unembedded)

    assert out[0].shape == (B, S, D)
    assert wrapper.activations.shape == (B, S, D)
    assert wrapper.attn_activations.shape == (B, S, D)
    assert wrapper.block_output_unembedded.shape == (B, S, V)
    assert wrapper.attn_out_unembedded.shape == (B, S, V)
    assert wrapper.intermediate_resid_unembedded.shape == (B, S, V)
    assert wrapper.mlp_out_unembedded.shape == (B, S, V)
    print("KERNEL_OK")
</pallas_src>

<mosaic_0001>
module attributes {stable_mosaic.version = 11 : i64} {
  func.func @_block_kernel(%arg0: i32, %arg1: memref<1x8x32xf32, #tpu.memory_space<vmem>>, %arg2: memref<1x32xf32, #tpu.memory_space<vmem>>, %arg3: memref<32x96xbf16, #tpu.memory_space<vmem>>, %arg4: memref<32x32xbf16, #tpu.memory_space<vmem>>, %arg5: memref<1x32xf32, #tpu.memory_space<vmem>>, %arg6: memref<32x128xbf16, #tpu.memory_space<vmem>>, %arg7: memref<64x32xbf16, #tpu.memory_space<vmem>>, %arg8: memref<1x8x32xf32, #tpu.memory_space<vmem>>, %arg9: memref<1x8x32xf32, #tpu.memory_space<vmem>>, %arg10: memref<1x8x32xf32, #tpu.memory_space<vmem>>, %arg11: memref<8x32xf32, #tpu.memory_space<vmem>>) attributes {dimension_semantics = [#tpu.dimension_semantics<parallel>], iteration_bounds = array<i64: 2>, scalar_prefetch = 0 : i64, scratch_operands = 1 : i64, tpu.core_type = #tpu.core_type<tc>, window_params = [{transform_indices = @transform_0, window_bounds = array<i64: 1, 8, 32>}, {pipeline_mode = #tpu.pipeline_mode<synchronous>, transform_indices = @transform_1, window_bounds = array<i64: 1, 32>}, {pipeline_mode = #tpu.pipeline_mode<synchronous>, transform_indices = @transform_2, window_bounds = array<i64: 32, 96>}, {pipeline_mode = #tpu.pipeline_mode<synchronous>, transform_indices = @transform_3, window_bounds = array<i64: 32, 32>}, {pipeline_mode = #tpu.pipeline_mode<synchronous>, transform_indices = @transform_4, window_bounds = array<i64: 1, 32>}, {pipeline_mode = #tpu.pipeline_mode<synchronous>, transform_indices = @transform_5, window_bounds = array<i64: 32, 128>}, {pipeline_mode = #tpu.pipeline_mode<synchronous>, transform_indices = @transform_6, window_bounds = array<i64: 64, 32>}, {transform_indices = @transform_7, window_bounds = array<i64: 1, 8, 32>}, {transform_indices = @transform_8, window_bounds = array<i64: 1, 8, 32>}, {transform_indices = @transform_9, window_bounds = array<i64: 1, 8, 32>}]} {
    %c0 = arith.constant 0 : index
    %c0_0 = arith.constant 0 : index
    %c0_1 = arith.constant 0 : index
    %0 = vector.load %arg1[%c0, %c0_0, %c0_1] : memref<1x8x32xf32, #tpu.memory_space<vmem>>, vector<1x8x32xf32>
    %1 = vector.shape_cast %0 : vector<1x8x32xf32> to vector<8x32xf32>
    %c0_2 = arith.constant 0 : index
    %c0_3 = arith.constant 0 : index
    %2 = vector.load %arg2[%c0_2, %c0_3] : memref<1x32xf32, #tpu.memory_space<vmem>>, vector<1x32xf32>
    %3 = arith.mulf %1, %1 : vector<8x32xf32>
    %cst = arith.constant dense<0.000000e+00> : vector<8xf32>
    %4 = vector.multi_reduction <add>, %3, %cst [1] : vector<8x32xf32> to vector<8xf32>
    %5 = vector.shape_cast %4 : vector<8xf32> to vector<8x1xf32>
    %cst_4 = arith.constant 3.200000e+01 : f32
    %6 = vector.broadcast %cst_4 : f32 to vector<8x1xf32>
    %7 = arith.divf %5, %6 : vector<8x1xf32>
    %cst_5 = arith.constant 9.99999997E-7 : f32
    %8 = vector.broadcast %cst_5 : f32 to vector<8x1xf32>
    %9 = arith.addf %7, %8 : vector<8x1xf32>
    %10 = math.rsqrt %9 : vector<8x1xf32>
    %11 = vector.broadcast %10 : vector<8x1xf32> to vector<8x32xf32>
    %12 = arith.mulf %1, %11 : vector<8x32xf32>
    %13 = vector.broadcast %2 : vector<1x32xf32> to vector<8x32xf32>
    %14 = arith.mulf %12, %13 : vector<8x32xf32>
    %15 = arith.truncf %14 : vector<8x32xf32> to vector<8x32xbf16>
    %c0_6 = arith.constant 0 : index
    %c0_7 = arith.constant 0 : index
    %16 = vector.load %arg3[%c0_6, %c0_7] : memref<32x96xbf16, #tpu.memory_space<vmem>>, vector<32x96xbf16>
    %cst_8 = arith.constant dense<0.000000e+00> : vector<8x96xf32>
    %17 = tpu.matmul %15, %16, %cst_8 {dimension_numbers = #tpu.dot_dimension_numbers<[1], [0], [0], [1], [0, 0, 1, 1], [], []>} : vector<8x32xbf16>, vector<32x96xbf16>, vector<8x96xf32> -> vector<8x96xf32>
    %18 = tpu.iota {dimensions = array<i32: 0>} : vector<8x8xi32>
    %19 = tpu.iota {dimensions = array<i32: 1>} : vector<8x8xi32>
    %20 = arith.cmpi sge, %18, %19 : vector<8x8xi32>
    %21 = vector.extract_strided_slice %17 {offsets = [0, 0], sizes = [8, 16], strides = [1, 1]} : vector<8x96xf32> to vector<8x16xf32>
    %cst_9 = arith.constant 2.500000e-01 : f32
    %22 = vector.broadcast %cst_9 : f32 to vector<8x16xf32>
    %23 = arith.mulf %21, %22 : vector<8x16xf32>
    %24 = vector.extract_strided_slice %17 {offsets = [0, 32], sizes = [8, 16], strides = [1, 1]} : vector<8x96xf32> to vector<8x16xf32>
    %25 = vector.extract_strided_slice %17 {offsets = [0, 64], sizes = [8, 16], strides = [1, 1]} : vector<8x96xf32> to vector<8x16xf32>
    %cst_10 = arith.constant dense<0.000000e+00> : vector<8x8xf32>
    %26 = tpu.matmul %23, %24, %cst_10 {dimension_numbers = #tpu.dot_dimension_numbers<[1], [1], [0], [0], [0, 0, 1, 0], [], []>} : vector<8x16xf32>, vector<8x16xf32>, vector<8x8xf32> -> vector<8x8xf32>
    %cst_11 = arith.constant -1.000000e+30 : f32
    %27 = vector.broadcast %cst_11 : f32 to vector<8x8xf32>
    %28 = arith.select %20, %26, %27 : vector<8x8xi1>, vector<8x8xf32>
    %cst_12 = arith.constant dense<0xFF800000> : vector<8xf32>
    %29 = vector.multi_reduction <maximumf>, %28, %cst_12 [1] : vector<8x8xf32> to vector<8xf32>
    %30 = vector.shape_cast %29 : vector<8xf32> to vector<8x1xf32>
    %31 = vector.broadcast %30 : vector<8x1xf32> to vector<8x8xf32>
    %32 = arith.subf %28, %31 : vector<8x8xf32>
    %33 = math.exp %32 : vector<8x8xf32>
    %cst_13 = arith.constant dense<0.000000e+00> : vector<8xf32>
    %34 = vector.multi_reduction <add>, %33, %cst_13 [1] : vector<8x8xf32> to vector<8xf32>
    %35 = vector.shape_cast %34 : vector<8xf32> to vector<8x1xf32>
    %36 = tpu.reciprocal %35 {approx = true} : vector<8x1xf32> -> vector<8x1xf32>
    %37 = vector.broadcast %36 : vector<8x1xf32> to vector<8x8xf32>
    %38 = arith.mulf %33, %37 : vector<8x8xf32>
    %cst_14 = arith.constant dense<0.000000e+00> : vector<8x16xf32>
    %39 = tpu.matmul %38, %25, %cst_14 {dimension_numbers = #tpu.dot_dimension_numbers<[1], [0], [0], [1], [0, 0, 1, 1], [], []>} : vector<8x8xf32>, vector<8x16xf32>, vector<8x16xf32> -> vector<8x16xf32>
    %c0_15 = arith.constant 0 : index
    %c0_16 = arith.constant 0 : index
    %40 = vector.load %arg11[%c0_15, %c0_16] : memref<8x32xf32, #tpu.memory_space<vmem>>, vector<8x16xf32>
    tpu.vector_store %arg11[%c0_15, %c0_16], %39 {strides = array<i32>} : memref<8x32xf32, #tpu.memory_space<vmem>>, vector<8x16xf32>,
    %41 = vector.extract_strided_slice %17 {offsets = [0, 16], sizes = [8, 16], strides = [1, 1]} : vector<8x96xf32> to vector<8x16xf32>
    %cst_17 = arith.constant 2.500000e-01 : f32
    %42 = vector.broadcast %cst_17 : f32 to vector<8x16xf32>
    %43 = arith.mulf %41, %42 : vector<8x16xf32>
    %44 = vector.extract_strided_slice %17 {offsets = [0, 48], sizes = [8, 16], strides = [1, 1]} : vector<8x96xf32> to vector<8x16xf32>
    %45 = vector.extract_strided_slice %17 {offsets = [0, 80], sizes = [8, 16], strides = [1, 1]} : vector<8x96xf32> to vector<8x16xf32>
    %cst_18 = arith.constant dense<0.000000e+00> : vector<8x8xf32>
    %46 = tpu.matmul %43, %44, %cst_18 {dimension_numbers = #tpu.dot_dimension_numbers<[1], [1], [0], [0], [0, 0, 1, 0], [], []>} : vector<8x16xf32>, vector<8x16xf32>, vector<8x8xf32> -> vector<8x8xf32>
    %cst_19 = arith.constant -1.000000e+30 : f32
    %47 = vector.broadcast %cst_19 : f32 to vector<8x8xf32>
    %48 = arith.select %20, %46, %47 : vector<8x8xi1>, vector<8x8xf32>
    %cst_20 = arith.constant dense<0xFF800000> : vector<8xf32>
    %49 = vector.multi_reduction <maximumf>, %48, %cst_20 [1] : vector<8x8xf32> to vector<8xf32>
    %50 = vector.shape_cast %49 : vector<8xf32> to vector<8x1xf32>
    %51 = vector.broadcast %50 : vector<8x1xf32> to vector<8x8xf32>
    %52 = arith.subf %48, %51 : vector<8x8xf32>
    %53 = math.exp %52 : vector<8x8xf32>
    %cst_21 = arith.constant dense<0.000000e+00> : vector<8xf32>
    %54 = vector.multi_reduction <add>, %53, %cst_21 [1] : vector<8x8xf32> to vector<8xf32>
    %55 = vector.shape_cast %54 : vector<8xf32> to vector<8x1xf32>
    %56 = tpu.reciprocal %55 {approx = true} : vector<8x1xf32> -> vector<8x1xf32>
    %57 = vector.broadcast %56 : vector<8x1xf32> to vector<8x8xf32>
    %58 = arith.mulf %53, %57 : vector<8x8xf32>
    %cst_22 = arith.constant dense<0.000000e+00> : vector<8x16xf32>
    %59 = tpu.matmul %58, %45, %cst_22 {dimension_numbers = #tpu.dot_dimension_numbers<[1], [0], [0], [1], [0, 0, 1, 1], [], []>} : vector<8x8xf32>, vector<8x16xf32>, vector<8x16xf32> -> vector<8x16xf32>
    %c0_23 = arith.constant 0 : index
    %c16 = arith.constant 16 : index
    %60 = vector.load %arg11[%c0_23, %c16] : memref<8x32xf32, #tpu.memory_space<vmem>>, vector<8x16xf32>
    tpu.vector_store %arg11[%c0_23, %c16], %59 {strides = array<i32>} : memref<8x32xf32, #tpu.memory_space<vmem>>, vector<8x16xf32>,
    %c0_24 = arith.constant 0 : index
    %c0_25 = arith.constant 0 : index
    %61 = vector.load %arg11[%c0_24, %c0_25] : memref<8x32xf32, #tpu.memory_space<vmem>>, vector<8x32xf32>
    %62 = arith.truncf %61 : vector<8x32xf32> to vector<8x32xbf16>
    %c0_26 = arith.constant 0 : index
    %c0_27 = arith.constant 0 : index
    %63 = vector.load %arg4[%c0_26, %c0_27] : memref<32x32xbf16, #tpu.memory_space<vmem>>, vector<32x32xbf16>
    %cst_28 = arith.constant dense<0.000000e+00> : vector<8x32xf32>
    %64 = tpu.matmul %62, %63, %cst_28 {dimension_numbers = #tpu.dot_dimension_numbers<[1], [0], [0], [1], [0, 0, 1, 1], [], []>} : vector<8x32xbf16>, vector<32x32xbf16>, vector<8x32xf32> -> vector<8x32xf32>
    %c0_29 = arith.constant 0 : index
    %c0_30 = arith.constant 0 : index
    %c0_31 = arith.constant 0 : index
    %65 = vector.load %arg9[%c0_29, %c0_30, %c0_31] : memref<1x8x32xf32, #tpu.memory_space<vmem>>, vector<1x8x32xf32>
    %66 = vector.shape_cast %65 : vector<1x8x32xf32> to vector<8x32xf32>
    %67 = vector.shape_cast %64 : vector<8x32xf32> to vector<1x8x32xf32>
    tpu.vector_store %arg9[%c0_29, %c0_30, %c0_31], %67 {strides = array<i32>} : memref<1x8x32xf32, #tpu.memory_space<vmem>>, vector<1x8x32xf32>,
    %68 = arith.addf %1, %64 : vector<8x32xf32>
    %c0_32 = arith.constant 0 : index
    %c0_33 = arith.constant 0 : index
    %69 = vector.load %arg5[%c0_32, %c0_33] : memref<1x32xf32, #tpu.memory_space<vmem>>, vector<1x32xf32>
    %70 = arith.mulf %68, %68 : vector<8x32xf32>
    %cst_34 = arith.constant dense<0.000000e+00> : vector<8xf32>
    %71 = vector.multi_reduction <add>, %70, %cst_34 [1] : vector<8x32xf32> to vector<8xf32>
    %72 = vector.shape_cast %71 : vector<8xf32> to vector<8x1xf32>
    %cst_35 = arith.constant 3.200000e+01 : f32
    %73 = vector.broadcast %cst_35 : f32 to vector<8x1xf32>
    %74 = arith.divf %72, %73 : vector<8x1xf32>
    %cst_36 = arith.constant 9.99999997E-7 : f32
    %75 = vector.broadcast %cst_36 : f32 to vector<8x1xf32>
    %76 = arith.addf %74, %75 : vector<8x1xf32>
    %77 = math.rsqrt %76 : vector<8x1xf32>
    %78 = vector.broadcast %77 : vector<8x1xf32> to vector<8x32xf32>
    %79 = arith.mulf %68, %78 : vector<8x32xf32>
    %80 = vector.broadcast %69 : vector<1x32xf32> to vector<8x32xf32>
    %81 = arith.mulf %79, %80 : vector<8x32xf32>
    %82 = arith.truncf %81 : vector<8x32xf32> to vector<8x32xbf16>
    %c0_37 = arith.constant 0 : index
    %c0_38 = arith.constant 0 : index
    %83 = vector.load %arg6[%c0_37, %c0_38] : memref<32x128xbf16, #tpu.memory_space<vmem>>, vector<32x128xbf16>
    %cst_39 = arith.constant dense<0.000000e+00> : vector<8x128xf32>
    %84 = tpu.matmul %82, %83, %cst_39 {dimension_numbers = #tpu.dot_dimension_numbers<[1], [0], [0], [1], [0, 0, 1, 1], [], []>} : vector<8x32xbf16>, vector<32x128xbf16>, vector<8x128xf32> -> vector<8x128xf32>
    %85 = vector.extract_strided_slice %84 {offsets = [0, 0], sizes = [8, 64], strides = [1, 1]} : vector<8x128xf32> to vector<8x64xf32>
    %86 = vector.extract_strided_slice %84 {offsets = [0, 64], sizes = [8, 64], strides = [1, 1]} : vector<8x128xf32> to vector<8x64xf32>
    %87 = arith.negf %85 : vector<8x64xf32>
    %88 = math.exp %87 : vector<8x64xf32>
    %cst_40 = arith.constant 1.000000e+00 : f32
    %89 = vector.broadcast %cst_40 : f32 to vector<8x64xf32>
    %90 = arith.addf %89, %88 : vector<8x64xf32>
    %91 = arith.divf %89, %90 : vector<8x64xf32>
    %92 = arith.mulf %85, %91 : vector<8x64xf32>
    %93 = arith.mulf %92, %86 : vector<8x64xf32>
    %94 = arith.truncf %93 : vector<8x64xf32> to vector<8x64xbf16>
    %c0_41 = arith.constant 0 : index
    %c0_42 = arith.constant 0 : index
    %95 = vector.load %arg7[%c0_41, %c0_42] : memref<64x32xbf16, #tpu.memory_space<vmem>>, vector<64x32xbf16>
    %cst_43 = arith.constant dense<0.000000e+00> : vector<8x32xf32>
    %96 = tpu.matmul %94, %95, %cst_43 {dimension_numbers = #tpu.dot_dimension_numbers<[1], [0], [0], [1], [0, 0, 1, 1], [], []>} : vector<8x64xbf16>, vector<64x32xbf16>, vector<8x32xf32> -> vector<8x32xf32>
    %c0_44 = arith.constant 0 : index
    %c0_45 = arith.constant 0 : index
    %c0_46 = arith.constant 0 : index
    %97 = vector.load %arg10[%c0_44, %c0_45, %c0_46] : memref<1x8x32xf32, #tpu.memory_space<vmem>>, vector<1x8x32xf32>
    %98 = vector.shape_cast %97 : vector<1x8x32xf32> to vector<8x32xf32>
    %99 = vector.shape_cast %96 : vector<8x32xf32> to vector<1x8x32xf32>
    tpu.vector_store %arg10[%c0_44, %c0_45, %c0_46], %99 {strides = array<i32>} : memref<1x8x32xf32, #tpu.memory_space<vmem>>, vector<1x8x32xf32>,
    %100 = arith.addf %68, %96 : vector<8x32xf32>
    %c0_47 = arith.constant 0 : index
    %c0_48 = arith.constant 0 : index
    %c0_49 = arith.constant 0 : index
    %101 = vector.load %arg8[%c0_47, %c0_48, %c0_49] : memref<1x8x32xf32, #tpu.memory_space<vmem>>, vector<1x8x32xf32>
    %102 = vector.shape_cast %101 : vector<1x8x32xf32> to vector<8x32xf32>
    %103 = vector.shape_cast %100 : vector<8x32xf32> to vector<1x8x32xf32>
    tpu.vector_store %arg8[%c0_47, %c0_48, %c0_49], %103 {strides = array<i32>} : memref<1x8x32xf32, #tpu.memory_space<vmem>>, vector<1x8x32xf32>,
    return
  }
  func.func @transform_0(%arg0: i32) -> (i32, i32, i32) {
    %c0_i32 = arith.constant 0 : i32
    %c0_i32_0 = arith.constant 0 : i32
    %c0_i32_1 = arith.constant 0 : i32
    return %arg0, %c0_i32, %c0_i32_0 : i32, i32, i32
  }
  func.func @transform_1(%arg0: i32) -> (i32, i32) {
    %c0_i32 = arith.constant 0 : i32
    %c0_i32_0 = arith.constant 0 : i32
    %c0_i32_1 = arith.constant 0 : i32
    return %c0_i32, %c0_i32_0 : i32, i32
  }
  func.func @transform_2(%arg0: i32) -> (i32, i32) {
    %c0_i32 = arith.constant 0 : i32
    %c0_i32_0 = arith.constant 0 : i32
    %c0_i32_1 = arith.constant 0 : i32
    return %c0_i32, %c0_i32_0 : i32, i32
  }
  func.func @transform_3(%arg0: i32) -> (i32, i32) {
    %c0_i32 = arith.constant 0 : i32
    %c0_i32_0 = arith.constant 0 : i32
    %c0_i32_1 = arith.constant 0 : i32
    return %c0_i32, %c0_i32_0 : i32, i32
  }
  func.func @transform_4(%arg0: i32) -> (i32, i32) {
    %c0_i32 = arith.constant 0 : i32
    %c0_i32_0 = arith.constant 0 : i32
    %c0_i32_1 = arith.constant 0 : i32
    return %c0_i32, %c0_i32_0 : i32, i32
  }
  func.func @transform_5(%arg0: i32) -> (i32, i32) {
    %c0_i32 = arith.constant 0 : i32
    %c0_i32_0 = arith.constant 0 : i32
    %c0_i32_1 = arith.constant 0 : i32
    return %c0_i32, %c0_i32_0 : i32, i32
  }
  func.func @transform_6(%arg0: i32) -> (i32, i32) {
    %c0_i32 = arith.constant 0 : i32
    %c0_i32_0 = arith.constant 0 : i32
    %c0_i32_1 = arith.constant 0 : i32
    return %c0_i32, %c0_i32_0 : i32, i32
  }
  func.func @transform_7(%arg0: i32) -> (i32, i32, i32) {
    %c0_i32 = arith.constant 0 : i32
    %c0_i32_0 = arith.constant 0 : i32
    %c0_i32_1 = arith.constant 0 : i32
    return %arg0, %c0_i32, %c0_i32_0 : i32, i32, i32
  }
  func.func @transform_8(%arg0: i32) -> (i32, i32, i32) {
    %c0_i32 = arith.constant 0 : i32
    %c0_i32_0 = arith.constant 0 : i32
    %c0_i32_1 = arith.constant 0 : i32
    return %arg0, %c0_i32, %c0_i32_0 : i32, i32, i32
  }
  func.func @transform_9(%arg0: i32) -> (i32, i32, i32) {
    %c0_i32 = arith.constant 0 : i32
    %c0_i32_0 = arith.constant 0 : i32
    %c0_i32_1 = arith.constant 0 : i32
    return %arg0, %c0_i32, %c0_i32_0 : i32, i32, i32
  }
}

module attributes {stable_mosaic.version = 11 : i64} {
  func.func @_unembed_kernel(%arg0: i32, %arg1: i32, %arg2: memref<32x32xbf16, #tpu.memory_space<vmem>>, %arg3: memref<32x128xbf16, #tpu.memory_space<vmem>>, %arg4: memref<32x128xf32, #tpu.memory_space<vmem>>) attributes {dimension_semantics = [#tpu.dimension_semantics<parallel>, #tpu.dimension_semantics<parallel>], iteration_bounds = array<i64: 1, 2>, scalar_prefetch = 0 : i64, scratch_operands = 0 : i64, tpu.core_type = #tpu.core_type<tc>, window_params = [{transform_indices = @transform_0, window_bounds = array<i64: 32, 32>}, {transform_indices = @transform_1, window_bounds = array<i64: 32, 128>}, {transform_indices = @transform_2, window_bounds = array<i64: 32, 128>}]} {
    %c0 = arith.constant 0 : index
    %c0_0 = arith.constant 0 : index
    %0 = vector.load %arg2[%c0, %c0_0] : memref<32x32xbf16, #tpu.memory_space<vmem>>, vector<32x32xbf16>
    %c0_1 = arith.constant 0 : index
    %c0_2 = arith.constant 0 : index
    %1 = vector.load %arg3[%c0_1, %c0_2] : memref<32x128xbf16, #tpu.memory_space<vmem>>, vector<32x128xbf16>
    %cst = arith.constant dense<0.000000e+00> : vector<32x128xf32>
    %2 = tpu.matmul %0, %1, %cst {dimension_numbers = #tpu.dot_dimension_numbers<[1], [0], [0], [1], [0, 0, 1, 1], [], []>} : vector<32x32xbf16>, vector<32x128xbf16>, vector<32x128xf32> -> vector<32x128xf32>
    %c0_3 = arith.constant 0 : index
    %c0_4 = arith.constant 0 : index
    %3 = vector.load %arg4[%c0_3, %c0_4] : memref<32x128xf32, #tpu.memory_space<vmem>>, vector<32x128xf32>
    tpu.vector_store %arg4[%c0_3, %c0_4], %2 {strides = array<i32>} : memref<32x128xf32, #tpu.memory_space<vmem>>, vector<32x128xf32>,
    return
  }
  func.func @transform_0(%arg0: i32, %arg1: i32) -> (i32, i32) {
    %c0_i32 = arith.constant 0 : i32
    %c0_i32_0 = arith.constant 0 : i32
    return %arg1, %c0_i32 : i32, i32
  }
  func.func @transform_1(%arg0: i32, %arg1: i32) -> (i32, i32) {
    %c0_i32 = arith.constant 0 : i32
    %c0_i32_0 = arith.constant 0 : i32
    return %c0_i32, %arg0 : i32, i32
  }
  func.func @transform_2(%arg0: i32, %arg1: i32) -> (i32, i32) {
    %c0_i32 = arith.constant 0 : i32
    return %arg1, %arg0 : i32, i32
  }
}

</mosaic_0001>

<bundles_post_ra>
// kernel: _forward_jit.3
= control target key start
LH: loop header
LB: loop body
LE: loop exit
PB: predicated region body
PF: predicated region fallthrough
CT: control target
= control target key end

     0   :  { %7 = vsyncpa [#allocation3], 0  ;;  %s681_s0 = inlined_call_operand.vmem [shape: bf16[64,32], index: 0, kind: input, shape index: {}]   ;;  %s682_s1 = inlined_call_operand.vmem [shape: bf16[32,128], index: 1, kind: input, shape index: {}]   ;;  %s683_s2 = inlined_call_operand.hbm [shape: f32[64,128], index: 2, kind: output, shape index: {}]  }
   0x1   :  { %9 = vsyncpa [#allocation3 + $0x1], 0  ;;  %s561_s9 = smov 0   ;;  %s563_s10 = smov 0  }
   0x2   :  { %s565_s11 = smov 0   ;;  %s567_s12 = smov 0  }
   0x3   :  { %s569_s13 = smov 0   ;;  %s571_s14 = smov 0  }
   0x4 LB: > { %s369_s15 = sadd.s32 4294967295, %s541_s14   ;;  %s370_s16 = sadd.s32 4294967294, %s541_s14   ;;  %s541_s14 = sphi %s571_s14, %s15_s14   ;;  %s537_s13 = sphi %s569_s13, %s690_s13   ;;  %s533_s12 = sphi %s567_s12, %s689_s12   ;;  %s529_s11 = sphi %s565_s11, %s688_s11   ;;  %s525_s10 = sphi %s563_s10, %s687_s10   ;;  %s521_s9 = sphi %s561_s9, %s686_s9  }
   0x5   : > { %s24_s17 = sadd.s32 1, %s537_s13  ;;  %s88_s18 = sadd.s32 1, %s529_s11 }
   0x6   : > { %p25_p0 = scmp.ge.s32.totalorder %s24_s17, 2  ;;  %p98_p1 = scmp.ne.s32.totalorder %s529_s11, %s525_s10 }
   0x7   : > { %p99_p2 = scmp.eq.s32.totalorder %s369_s15, 1  ;;  %p104_p3 = scmp.ne.s32.totalorder %s525_s10, %s521_s9 }
   0x8   : > { %s692_s17 = smov (%p25_p0, %s24_s17), 0  ;;  %p105_p5 = scmp.eq.s32.totalorder %s370_s16, 1 }
   0x9   : > { %p601_p4 = por %p99_p2, %p98_p1  ;;  %s83_s20 = ssub.s32 %s537_s13, %s692_s17 }
   0xa   : > { %p374_p6 = scmp.ge.s32.totalorder %s541_s14, 1  ;;  %p86_p7 = scmp.eq.s32.totalorder %s83_s20, 0 }
   0xb   : > { %p608_p8 = por %p105_p5, %p104_p3  ;;  %p139_p9 = scmp.lt.s32.totalorder %s541_s14, 3 }
   0xc   : > { %s614_s22 = scalar_select %p86_p7, %s529_s11, %s88_s18  }
   0xd   : > { %p140_p10 = pnand %p374_p6, %p139_p9 }
   0xe   : > { %v459_v0 = vld [vmem:[%s682_s1] sm:$0xff] (!%p140_p10)   ;;  %s376_s25 = sshll.u32 (!%p140_p10), %s533_s12, 2  ;;  %v460_v1 = vld [vmem:[%s682_s1 + $0x8] sm:$0xff] (!%p140_p10)   ;;  %vm207_vm0 = vcmask (!%p140_p10), 261120   ;;  %s162_s4 = sand.u32 (!%p140_p10), 1, %s525_s10  }
   0xf   : > { %143 = sbr.rel (%p140_p10) target bundleno = 257 (0x101), region = 28  ;;  %p166_p11 = scmp.lt.s32.totalorder (!%p140_p10), %s376_s25, 7  ;;  %394 = vmatprep.subr.bf16.mxu0 (!%p140_p10), %v459_v0 }
  0x10   : > { %395 = vmatpush3.bf16.msra.mxu0 (!%p140_p10), %v459_v0  ;;  %s375_s5 = sshll.u32 (!%p140_p10), %s162_s4, 5  ;;  %s389_s8 = sshll.u32 (!%p140_p10), %s533_s12, 9 }
  0x11   : > { %396 = vmatprep.subr.bf16.mxu0 (!%p140_p10), %v460_v1  ;;  %s164_s6 = scalar_lea.vmem (!%p140_p10), [#allocation2], %s375_s5  ;;  %s633_s18 = scalar_lea.hbm (!%p140_p10), %s683_s2, %s389_s8 }
  0x12   : > { %s282_s7 = sshll.u32 (!%p140_p10), %s164_s6, 4  ;;  %s635_s20 = scalar_lea.sflag (!%p140_p10), [#allocation3], %s162_s4  ;;  %s628_s7 = int_to_ptr.vmem [resolvable:$true] %s282_s7 }
  0x13   : > { %s463_s12 = scalar_lea.vmem (!%p140_p10), %s628_s7, 512  ;;  %s543_s23 = smov (!%p140_p10), [#allocation2]  }
  0x14   : > { %397 = vmatpush3.bf16.msra.mxu0 (!%p140_p10), %v460_v1  ;;  %p464_p12 = scmp.ne.s32.totalorder (!%p140_p10), %s628_s7, %s463_s12  ;;  %s467_s24 = sshll.u32 (!%p140_p10), %s543_s23, 4  ;;  %s468_s24 = int_to_ptr.vmem [resolvable:$false] %s467_s24 }
  0x15   : > { %p470_p1 = scmp.lt.s32.totalorder (!%p140_p10), %s628_s7, %s468_s24 }
  0x16   : > { %s694_s25 = smov (!%p166_p11, %s376_s25), 7  ;;  %p465_p13 = pnand %p464_p12, %p601_p4 }
  0x17   : > { %s377_s28 = sshll.u32 %s694_s25, 2  ;;  %s469_s25 = scalar_lea.vmem %s468_s24, 1024 }
  0x18   : > { %s169_s3 = scalar_lea.vmem %s681_s0, %s377_s28  ;;  %p466_p0 = pneg %p465_p13 }
  0x19   : > { %v461_v2 = vld [vmem:[%s169_s3] sm:$0xff]   ;;  %v462_v3 = vld [vmem:[%s169_s3 + $0x8] sm:$0xff]   ;;  %p471_p2 = scmp.lt.s32.totalorder %s469_s25, %s463_s12 }
  0x1a   : > { %398 = vmatprep.mubr.msk.bf16.mxu0 %vm207_vm0, %v461_v2 }
  0x1b   : > { %399 = vmatmul.mubr.msk.bf16.vlgmr.msra.gmra.mrb[0].mxu0 %vm207_vm0, %v462_v3  ;;  %p472_p3 = por %p471_p2, %p470_p1 }
  0x1d   : > { %p473_p5 = pnand %p472_p3, %p466_p0 }
  0xee   : > { %v400_v4 = vpop.f32.mrb[0].mxu0 }
  0xef   : > { %265 = vst [vmem:[%s164_s6 + $0x10] sm:$0xff] %v400_v4  ;;  %v248_v5 = vpop.f32.mrb[1].mxu0 }
  0xf0   : > { %263 = vst [vmem:[%s164_s6] sm:$0xff] %v248_v5  ;;  %v401_v6 = vpop.f32.mrb[2].mxu0 }
  0xf1   : > { %266 = vst [vmem:[%s164_s6 + $0x18] sm:$0xff] %v401_v6  ;;  %v251_v7 = vpop.f32.mrb[3].mxu0 }
  0xf2   : > { %264 = vst [vmem:[%s164_s6 + $0x8] sm:$0xff] %v251_v7 }
  0xf3   : > { %476 = shalt.err (!%p473_p5)
}
  0xf4   : > { %s477_s26 = scalar_lea.hbm %s633_s18, 512  ;;  %s481_s29 = scalar_lea.hbm %s683_s2, 1024 }
  0xf5   : > { %p478_p6 = scmp.ne.s32.totalorder %s633_s18, %s477_s26  ;;  %p482_p10 = scmp.lt.u32.totalorder %s633_s18, %s683_s2 }
  0xf6   : > { %p483_p11 = scmp.lt.u32.totalorder %s481_s29, %s477_s26  ;;  %p485_p13 = scmp.lt.u32.totalorder %s477_s26, %s633_s18 }
  0xf7   : > { %p479_p7 = pnand %p478_p6, %p601_p4 }
  0xf8   : > { %p484_p12 = por %p483_p11, %p482_p10 }
  0xf9   : > { %p480_p9 = pneg %p479_p7 }
  0xfa   : > { %p486_p0 = por %p485_p13, %p484_p12 }
  0xfc   : > { %p487_p1 = pnand %p486_p0, %p480_p9 }
  0xfe   : > { %490 = shalt.err (!%p487_p1)
}
  0xff   : > { %s544_s4 = smov 128   ;;  %s545_s5 = smov 8  }
 0x100   : > { %402 = dma.vmem_to_hbm [thread:$0]  (%p601_p4), %s628_s7, 512, %s633_s18, %s635_s20, %s544_s4, %s544_s4, %s545_s5  }
 0x101 PF: > { %p408_p2 = scmp.ge.s32.totalorder %s541_s14, 2  ;;  %s297_s6 = sand.u32 1, %s521_s9  }
 0x102   : > { %s298_s8 = scalar_lea.sflag [#allocation3], %s297_s6 }
 0x103   : > { %p405_p3 = pnand %p408_p2, %p608_p8 }
 0x105   : > { %516 = dma.done.wait (!%p405_p3), %s298_s8, 512  }
 0x106   : > { %518 = vsyncadd (!%p405_p3), %s298_s8, 4294966784  ;;  %s15_s14 = sadd.s32 1, %s541_s14   ;;  %s686_s9 = smov %s525_s10 }
 0x107   : > { %p12_p5 = scmp.ge.s32.totalorder %s15_s14, 4   ;;  %s687_s10 = smov %s529_s11 }
 0x108   : > { %s688_s11 = smov %s614_s22  ;;  %s689_s12 = smov %s537_s13 }
 0x109   : > { %s690_s13 = smov %s692_s17  ;;  %14 = sbr.rel (!%p12_p5) target bundleno = 4 (0x4), region = 66 }
 0x110   :  { %303 = vsyncpa [#allocation3], 1 }
 0x111   :  { %305 = vsyncpa [#allocation3 + $0x1], 1 }

// kernel: _forward_jit.2
= control target key start
LH: loop header
LB: loop body
LE: loop exit
PB: predicated region body
PF: predicated region fallthrough
CT: control target
= control target key end

     0   :  { %15 = vsyncpa [#allocation4], 0  ;;  %s1419_s30 = smov 0   ;;  %s1583_s0 = inlined_call_operand.vmem [shape: f32[2,8,32], index: 0, kind: input, shape index: {}]   ;;  %s1584_s1 = inlined_call_operand.vmem [shape: f32[1,32], index: 1, kind: input, shape index: {}]   ;;  %s1585_s2 = inlined_call_operand.vmem [shape: bf16[32,96], index: 2, kind: input, shape index: {}]   ;;  %s1586_s3 = inlined_call_operand.vmem [shape: bf16[32,32], index: 3, kind: input, shape index: {}]   ;;  %s1587_s4 = inlined_call_operand.vmem [shape: f32[1,32], index: 4, kind: input, shape index: {}]   ;;  %s1588_s5 = inlined_call_operand.hbm [shape: bf16[32,128], index: 5, kind: input, shape index: {}]   ;;  %s1589_s6 = inlined_call_operand.vmem [shape: bf16[64,32], index: 6, kind: input, shape index: {}]   ;;  %s1590_s7 = inlined_call_operand.vmem [shape: f32[2,8,32], index: 7, kind: output, shape index: {0}]   ;;  %s1591_s8 = inlined_call_operand.vmem [shape: f32[2,8,32], index: 8, kind: output, shape index: {1}]   ;;  %s1592_s9 = inlined_call_operand.vmem [shape: f32[2,8,32], index: 9, kind: output, shape index: {2}]  }
   0x1 LB: > { %s1425_s10 = sadd.s32 4294967295, %s1356_s30   ;;  %p1151_p0 = scmp.ge.s32.totalorder %s1356_s30, 1  ;;  %s1356_s30 = sphi %s1419_s30, %s21_s30  }
   0x2   : > { %p256_p1 = scmp.lt.s32.totalorder %s1356_s30, 3  ;;  %s1358_s11 = smov [#allocation3]  }
   0x3   : > { %s280_s12 = sshll.u32 %s1358_s11, 4  ;;  %p1593_p3 = scmp.eq.s32.totalorder %s1425_s10, 0  ;;  %s281_s12 = int_to_ptr.vmem [resolvable:$true] %s280_s12 }
   0x4   : > { %p1429_p2 = pnand %p1151_p0, %p256_p1  ;;  %s1318_s17 = scalar_lea.hbm %s1588_s5, 256 }
   0x5   : > { %p1319_p6 = scmp.ne.s32.totalorder %s1588_s5, %s1318_s17  ;;  %p1325_p10 = scmp.lt.u32.totalorder %s1318_s17, %s1588_s5 }
   0x6   : > { %s1595_s13 = scalar_select %p1429_p2, 1, 0 }
   0x7   : > { %p1267_p4 = pneg %p1429_p2 }
   0x9   : > { %p1438_p5 = pnand %p1593_p3, %p1267_p4 }
   0xb   : > { %p1320_p7 = pneg %p1438_p5 }
   0xd   : > { %p1321_p8 = pnand %p1320_p7, %p1319_p6 }
   0xf   : > { %p1322_p9 = pneg %p1321_p8 }
  0x11   : > { %p1327_p11 = pnand %p1325_p10, %p1322_p9 }
  0x13   : > { %1330 = shalt.err (!%p1327_p11)
}
  0x14   : > { %s1331_s22 = scalar_lea.vmem %s281_s12, 256  ;;  %p1339_p1 = scmp.lt.s32.totalorder %s281_s12, %s281_s12 }
  0x15   : > { %p1332_p12 = scmp.ne.s32.totalorder %s281_s12, %s1331_s22  ;;  %p1340_p4 = scmp.lt.s32.totalorder %s1331_s22, %s1331_s22 }
  0x17   : > { %p1334_p13 = pnand %p1332_p12, %p1320_p7  ;;  %p1341_p3 = por %p1340_p4, %p1339_p1 }
  0x19   : > { %p1335_p0 = pneg %p1334_p13 }
  0x1b   : > { %p1342_p2 = pnand %p1341_p3, %p1335_p0 }
  0x1d   : > { %1345 = shalt.err (!%p1342_p2)
}
  0x1e   : > { %s1359_s23 = smov 64   ;;  %s1360_s24 = smov 4  }
  0x1f   : > { %1270 = dma.hbm_to_vmem [thread:$0]  (!%p1438_p5), %s1588_s5, 256, %s281_s12, [#allocation4], %s1359_s23, %s1359_s23, %s1360_s24  }
  0x20   : > { %p1597_p6 = scmp.ne.s32.totalorder %s1595_s13, 0 }
  0x21   : > { %p1598_p8 = scmp.eq.s32.totalorder (!%p1597_p6), %s1425_s10, 0 }
  0x22   : > { %306 = sbr.rel (%p1597_p6) target bundleno = 2865 (0xb31), region = 48 }
  0x29   : > { %1351 = dma.done.wait (%p1598_p8), [#allocation4], 256   ;;  %p1599_p7 = pmov %p1598_p8 }
  0x2a   : > { %p348_p2 = scmp.lt.s32.totalorder %s1425_s10, 1  ;;  %vm368_vm0 = vcmask 261120   ;;  %v1292_v3 = vld [vmem:[%s1585_s2] sm:$0xff]   ;;  %v1361_v4 = vmov 0.0   ;;  %vm1362_vm1 = vmmov 0   ;;  %v1293_v5 = vld [vmem:[%s1585_s2 + $0x8] sm:$0xff]   ;;  %v444_v20 = vlaneseq }
  0x2b   : > { %1353 = vsyncadd (%p1599_p7), [#allocation4], 4294967040  ;;  %1207 = vmatprep.subr.bf16.mxu0 %v1361_v4  ;;  %1211 = vmatprep.mubr.msk.bf16.mxu0 %vm1362_vm1, %v1361_v4  ;;  %v1160_v10 = vld [vmem:[%s1584_s1] ss:$0 sm:$0xff]  ;;  %s1363_s17 = smov 96   ;;  %s1364_s18 = smov 112  }
  0x2c   : > { %s1601_s10 = smov (!%p348_p2, %s1425_s10), 1  ;;  %1208 = vmatpush3.bf16.msra.mxu0 %v1292_v3  ;;  %1220 = vmatprep.subr.mxu1 %v1361_v4  ;;  %vm453_vm2 = vcmask 130048   ;;  %v445_v21 = vshrl.u32 %v444_v20, 7  ;;  %v447_v22 = vand.u32 127, %v444_v20  ;;  %vm530_vm4 = vcmask 64512   ;;  %s1365_s19 = smov 64  }
  0x2d   : > { %s1466_s27 = sshll.u32 %s1601_s10, 3  ;;  %1209 = vmatprep.subr.bf16.mxu0 %v1361_v4  ;;  %1222 = vmatprep.mubr.msk.f32.mxu1 %vm1362_vm1, %v1361_v4  ;;  %s1366_s20 = smov 80   ;;  %v1294_v53 = vld [vmem:[%s1586_s3] sm:$0xff]   ;;  %v1295_v54 = vld [vmem:[%s1586_s3 + $0x8] sm:$0xff]   ;;  %vm789_vm5 = vcmask 261248   ;;  %vm975_vm6 = vcmask 523264  }
  0x2e   : > { %s351_s11 = scalar_lea.vmem %s1583_s0, %s1466_s27  ;;  %vm448_vm3 = vcmp.ge.s32.totalorder %v445_v21, %v447_v22  ;;  %s1367_s21 = smov 48  }
  0x2f   : > { %v1472_v0 = vld [vmem:[%s351_s11] sm:$0xff]  ;;  %s1368_s26 = smov 16   ;;  %s359_s11 = scalar_lea.vmem %s1591_s8, %s1466_s27 }
  0x30   : > { %v367_v1 = vmul.f32 %v1472_v0, %v1472_v0  ;;  %1210 = vmatpush3.bf16.msra.mxu0 %v1293_v5  ;;  %v1296_v5 = vld [vmem:[#allocation3] sm:$0xff]  }
  0x31   : > { %1215 = vmatprep.subr.mxu0 %v1361_v4 }
  0x32   : > { %v369_v2 = vsel %vm368_vm0, %v367_v1, 0.0 }
  0x33   : > { %370 = vadd.xlane.f32.xlu0 %v369_v2 }
  0xc0   : > { %v371_v6 = vpop.xlane.xlu0 %370 }
  0xc1   : > { %v373_v7 = vmul.f32 0.03125, %v371_v6  ;;  %v1297_v6 = vld [vmem:[#allocation3 + $0x8] sm:$0xff]  }
  0xc3   : > { %v374_v8 = vadd.f32 1e-06, %v373_v7 }
  0xc5   : > { %1302 = vrsqrt.f32 %v374_v8 }
  0xcf   : > { %v1303_v9 = vpop.eup %1302 }
  0xd0   : > { %v376_v11 = vmul.f32 %v1303_v9, %v1472_v0 }
  0xd2   : > { %v383_v12 = vmul.f32 %v1160_v10, %v376_v11 }
  0xd4   : > { %v384_v13 = vpack.c.bf16 %v383_v12, %v383_v12 }
  0xd6   : > { %1212 = vmatmul.mubr.msk.bf16.vlgmr.msra.gmra.mrb[0].mxu0 %vm368_vm0, %v384_v13 }
  0xd7   : > { %1217 = vmatprep.mubr.msk.f32.mxu0 %vm1362_vm1, %v1361_v4 }
 0x1a9   : > { %v1498_v14 = vpop.f32.mrb[0].mxu0 }
 0x1aa   : > { %451 = vrot.lane.b32.xlu0 %v1498_v14, %s1363_s17  ;;  %v1213_v15 = vpop.f32.mrb[1].mxu0  ;;  %v449_v18 = vmul.f32 0.25, %v1498_v14 }
 0x1ab   : > { %v441_v16 = vpop.f32.mrb[2].mxu0  ;;  %v1299_v15 = vld [vmem:[%s1589_s6 + $0x8] sm:$0xff]  }
 0x1ac   : > { %v1214_v17 = vpop.f32.mrb[3].mxu0  ;;  %v1300_v16 = vld [vmem:[%s1589_s6 + $0x10] sm:$0xff]  }
 0x1ad   : > { %v1301_v17 = vld [vmem:[%s1589_s6 + $0x18] sm:$0xff]  }
 0x1ae   : > { %619 = vrot.lane.b32.xlu0 %v449_v18, %s1364_s18 }
 0x21c   : > { %v452_v19 = vpop.permute.xlu0 %451 }
 0x21d   : > { %1216 = vmatpush3.xpose.msk.msra.mxu0 %vm453_vm2, %v452_v19 }
 0x21e   : > { %1230 = vmatprep.subr.mxu0 %v1361_v4 }
 0x220   : > { %1218 = vmatmul.mubr.msk.f32.vlgmr.msra.gmra.mrb[4].mxu0 %vm453_vm2, %v449_v18  ;;  %v620_v37 = vpop.permute.xlu0 %619 }
 0x221   : > { %1232 = vmatprep.mubr.msk.f32.mxu0 %vm1362_vm1, %v1361_v4 }
 0x2f3   : > { %v525_v23 = vpop.f32.mrb[4].mxu0 }
 0x2f4   : > { %v529_v24 = vsel %vm448_vm3, %v525_v23, -1e+30  ;;  %v1219_v25 = vpop.f32.mrb[5].mxu0 }
 0x2f5   : > { %v531_v26 = vsel %vm530_vm4, %v529_v24, -inf }
 0x2f6   : > { %532 = vmax.xlane.f32.xlu1 %v531_v26 }
 0x307   : > { %542 = vrot.lane.b32.xlu1 %v1498_v14, %s1365_s19 }
 0x383   : > { %v533_v27 = vpop.xlane.xlu1 %532 }
 0x384   : > { %v534_v28 = vsub.f32 %v529_v24, %v533_v27 }
 0x386   : > { %v535_v29 = vmul.f32 1.442695, %v534_v28 }
 0x387   : > { %v543_v30 = vpop.permute.xlu1 %542 }
 0x388   : > { %1304 = vpow2.f32 %v535_v29  ;;  %1221 = vmatpush3.msra.mxu1 %v543_v30 }
 0x389   : > { %1225 = vmatprep.subr.mxu1 %v1361_v4 }
 0x392   : > { %v1305_v31 = vpop.eup %1304 }
 0x393   : > { %v537_v32 = vsel %vm530_vm4, %v1305_v31, 0.0 }
 0x394   : > { %538 = vadd.xlane.f32.xlu1 %v537_v32 }
 0x3a5   : > { %621 = vrot.lane.b32.xlu1 %v1498_v14, %s1366_s20 }
 0x421   : > { %v539_v33 = vpop.xlane.xlu1 %538 }
 0x422   : > { %1306 = vrcp.f32 %v539_v33 }
 0x425   : > { %v622_v36 = vpop.permute.xlu1 %621 }
 0x42c   : > { %v1307_v34 = vpop.eup %1306 }
 0x42d   : > { %v541_v35 = vmul.f32 %v1307_v34, %v1305_v31 }
 0x42f   : > { %1223 = vmatmul.mubr.msk.f32.vlgmr.msra.gmra.mrb[0].mxu1 %vm530_vm4, %v541_v35 }
 0x430   : > { %1226 = vmatpush3.xpose.msk.msra.mxu1 %vm453_vm2, %v622_v36  ;;  %1227 = vmatprep.mubr.msk.f32.mxu1 %vm1362_vm1, %v1361_v4 }
 0x431   : > { %1235 = vmatprep.subr.bf16.mxu1 %v1361_v4 }
 0x433   : > { %1228 = vmatmul.mubr.msk.f32.vlgmr.msra.gmra.mrb[2].mxu1 %vm453_vm2, %v620_v37 }
 0x434   : > { %1239 = vmatprep.mubr.msk.bf16.mxu1 %vm1362_vm1, %v1361_v4  ;;  %1236 = vmatpush3.bf16.msra.mxu1 %v1294_v53 }
 0x435   : > { %1237 = vmatprep.subr.bf16.mxu1 %v1361_v4 }
 0x438   : > { %1238 = vmatpush3.bf16.msra.mxu1 %v1295_v54 }
 0x439   : > { %1251 = vmatprep.subr.bf16.mxu1 %v1361_v4 }
 0x502   : > { %v614_v38 = vpop.f32.mrb[0].mxu1 }
 0x503   : > { %618 = vst.msk [vmem:[#allocation2] sm:$0xff] %vm453_vm2, %v614_v38  ;;  %v1224_v39 = vpop.f32.mrb[1].mxu1 }
 0x506   : > { %v693_v40 = vpop.f32.mrb[2].mxu1 }
 0x507   : > { %v697_v41 = vsel %vm448_vm3, %v693_v40, -1e+30  ;;  %v1229_v42 = vpop.f32.mrb[3].mxu1 }
 0x508   : > { %v698_v43 = vsel %vm530_vm4, %v697_v41, -inf }
 0x509   : > { %699 = vmax.xlane.f32.xlu1 %v698_v43 }
 0x596   : > { %v700_v44 = vpop.xlane.xlu1 %699 }
 0x597   : > { %v701_v45 = vsub.f32 %v697_v41, %v700_v44 }
 0x599   : > { %v702_v46 = vmul.f32 1.442695, %v701_v45 }
 0x59b   : > { %1308 = vpow2.f32 %v702_v46 }
 0x5a5   : > { %v1309_v47 = vpop.eup %1308 }
 0x5a6   : > { %v704_v48 = vsel %vm530_vm4, %v1309_v47, 0.0 }
 0x5a7   : > { %705 = vadd.xlane.f32.xlu0 %v704_v48 }
 0x5bd   : > { %709 = vrot.lane.b32.xlu0 %v1498_v14, %s1367_s21  ;;  %v1298_v14 = vld [vmem:[%s1589_s6] sm:$0xff]  }
 0x634   : > { %v706_v49 = vpop.xlane.xlu0 %705 }
 0x635   : > { %1310 = vrcp.f32 %v706_v49 }
 0x638   : > { %v710_v50 = vpop.permute.xlu0 %709 }
 0x639   : > { %1231 = vmatpush3.msra.mxu0 %v710_v50 }
 0x63a   : > { %1243 = vmatprep.subr.bf16.mxu0 %v1361_v4 }
 0x63f   : > { %v1311_v51 = vpop.eup %1310 }
 0x640   : > { %v708_v52 = vmul.f32 %v1311_v51, %v1309_v47 }
 0x642   : > { %1233 = vmatmul.mubr.msk.f32.vlgmr.msra.gmra.mrb[6].mxu0 %vm530_vm4, %v708_v52 }
 0x643   : > { %1247 = vmatprep.mubr.msk.bf16.mxu0 %vm1362_vm1, %v1361_v4  ;;  %1244 = vmatpush3.bf16.msra.mxu0 %v1296_v5 }
 0x644   : > { %1245 = vmatprep.subr.bf16.mxu0 %v1361_v4 }
 0x647   : > { %1246 = vmatpush3.bf16.msra.mxu0 %v1297_v6 }
 0x715   : > { %v781_v55 = vpop.f32.mrb[6].mxu0 }
 0x716   : > { %786 = vrot.lane.b32.xlu1 %v781_v55, %s1368_s26  ;;  %v1234_v56 = vpop.f32.mrb[7].mxu0  ;;  %s355_s26 = scalar_lea.vmem %s1590_s7, %s1466_s27 }
 0x788   : > { %v787_v57 = vpop.permute.xlu1 %786 }
 0x789   : > { %790 = vst.msk [vmem:[#allocation2] sm:$0xff] %vm789_vm5, %v787_v57 }
 0x790   : > { %v791_v58 = vld [vmem:[#allocation2] sm:$0xff] }
 0x791   : > { %v792_v59 = vpack.c.bf16 %v791_v58, %v791_v58 }
 0x793   : > { %1240 = vmatmul.mubr.msk.bf16.vlgmr.msra.gmra.mrb[4].mxu1 %vm368_vm0, %v792_v59 }
 0x794   : > { %1259 = vmatprep.mubr.msk.bf16.mxu1 %vm1362_vm1, %v1361_v4  ;;  %1252 = vmatpush3.bf16.msra.mxu1 %v1298_v14 }
 0x795   : > { %1253 = vmatprep.subr.bf16.mxu1 %v1361_v4 }
 0x798   : > { %1254 = vmatpush3.bf16.msra.mxu1 %v1299_v15 }
 0x799   : > { %1255 = vmatprep.subr.bf16.mxu1 %v1361_v4 }
 0x79c   : > { %1256 = vmatpush3.bf16.msra.mxu1 %v1300_v16 }
 0x79d   : > { %1257 = vmatprep.subr.bf16.mxu1 %v1361_v4 }
 0x7a0   : > { %1258 = vmatpush3.bf16.msra.mxu1 %v1301_v17 }
 0x866   : > { %v846_v60 = vpop.f32.mrb[4].mxu1 }
 0x867   : > { %852 = vst.msk [vmem:[%s359_s11] sm:$0xff] %vm368_vm0, %v846_v60  ;;  %v853_v61 = vadd.f32 %v846_v60, %v1472_v0  ;;  %v1241_v62 = vpop.f32.mrb[5].mxu1  ;;  %v1173_v0 = vld [vmem:[%s1587_s4] ss:$0 sm:$0xff] }
 0x868   : > { %v849_v63 = vpop.f32.mrb[6].mxu1 }
 0x869   : > { %v1242_v1 = vpop.f32.mrb[7].mxu1  ;;  %v855_v2 = vmul.f32 %v853_v61, %v853_v61 }
 0x86b   : > { %v856_v3 = vsel %vm368_vm0, %v855_v2, 0.0 }
 0x86c   : > { %857 = vadd.xlane.f32.xlu1 %v856_v3 }
 0x8f9   : > { %v858_v7 = vpop.xlane.xlu1 %857 }
 0x8fa   : > { %v859_v8 = vmul.f32 0.03125, %v858_v7 }
 0x8fc   : > { %v860_v9 = vadd.f32 1e-06, %v859_v8 }
 0x8fe   : > { %1312 = vrsqrt.f32 %v860_v9 }
 0x908   : > { %v1313_v10 = vpop.eup %1312 }
 0x909   : > { %v862_v11 = vmul.f32 %v1313_v10, %v853_v61 }
 0x90b   : > { %v869_v12 = vmul.f32 %v1173_v0, %v862_v11 }
 0x90d   : > { %v870_v13 = vpack.c.bf16 %v869_v12, %v869_v12 }
 0x90f   : > { %1248 = vmatmul.mubr.msk.bf16.vlgmr.msra.gmra.mrb[8].mxu0 %vm368_vm0, %v870_v13 }
 0x9e2   : > { %v924_v18 = vpop.f32.mrb[8].mxu0 }
 0x9e3   : > { %938 = vrot.lane.b32.xlu0 %v924_v18, %s1365_s19  ;;  %v1249_v19 = vpop.f32.mrb[9].mxu0  ;;  %v1177_v22 = vmul.f32 -1.442695, %v924_v18  ;;  %s363_s19 = scalar_lea.vmem %s1592_s9, %s1466_s27 }
 0x9e4   : > { %v927_v20 = vpop.f32.mrb[10].mxu0 }
 0x9e5   : > { %v1250_v21 = vpop.f32.mrb[11].mxu0  ;;  %1314 = vpow2.f32 %v1177_v22 }
 0x9ef   : > { %v1315_v23 = vpop.eup %1314 }
 0x9f0   : > { %v933_v24 = vadd.f32 1.0, %v1315_v23 }
 0x9f2   : > { %1316 = vrcp.f32 %v933_v24 }
 0x9fc   : > { %v1317_v25 = vpop.eup %1316 }
 0x9fd   : > { %v936_v4 = vmul.f32 %v1317_v25, %v924_v18 }
 0xa55   : > { %v939_v26 = vpop.permute.xlu0 %938 }
 0xa56   : > { %v941_v27 = vmul.f32 %v939_v26, %v936_v4 }
 0xa58   : > { %v942_v28 = vpack.c.bf16 %v941_v27, %v941_v27 }
 0xa5a   : > { %1260 = vmatmul.mubr.msk.bf16.vlgmr.msra.gmra.mrb[8].mxu1 %vm975_vm6, %v942_v28 }
 0xb2d   : > { %v1013_v29 = vpop.f32.mrb[8].mxu1 }
 0xb2e   : > { %1019 = vst.msk [vmem:[%s363_s19] sm:$0xff] %vm368_vm0, %v1013_v29  ;;  %v1020_v30 = vadd.f32 %v1013_v29, %v853_v61  ;;  %v1261_v31 = vpop.f32.mrb[9].mxu1 }
 0xb2f   : > { %v1016_v32 = vpop.f32.mrb[10].mxu1 }
 0xb30   : > { %1021 = vst.msk [vmem:[%s355_s26] sm:$0xff] %vm368_vm0, %v1020_v30  ;;  %v1262_v33 = vpop.f32.mrb[11].mxu1 }
 0xb31 PF: > { %s21_s30 = sadd.s32 1, %s1356_s30  }
 0xb32   : > { %p18_p3 = scmp.ge.s32.totalorder %s21_s30, 4  }
 0xb34   :  { %20 = sbr.rel (!%p18_p3) target bundleno = 1 (0x1), region = 107 }
 0xb3b   :  { %1069 = vsyncpa [#allocation4], 1 }
 0xb3c   :  { %1071 = vsyncpa [#allocation4 + $0x1], 1 }

</bundles_post_ra>
